<compile_context>
chip_gen: v7x
topology: tpu7x:2x2x1
jax: 0.10.0
libtpu: 0.0.40
codegen_flags: <defaults>
</compile_context>

<pallas_src>
import jax
import jax.numpy as jnp
from jax import lax
from jax.experimental import pallas as pl
from jax.experimental.pallas import tpu as pltpu
import numpy as np

EPS = 1e-5


def inception_kernel(xflat_ref, b_ref, p_ref, pt_ref, ch_ref, out_ref):
    # xflat_ref: (N, H+2, Kpad)  zero-padded input; each padded row flattened to
    #                            (W+2)*Cin values, lane-padded with zeros to Kpad
    # b_ref:     (3*Kpad, Mout)  fused lowered conv weight, Mout = W*(C1+C3)
    # p_ref:     (Mout, Cout)    0/1 matrix: lane-group -> channel reduction
    # pt_ref:    (Cout, Mout)    0/1 matrix: channel -> lane-group broadcast (= P.T)
    # ch_ref:    (3, Cout)       rows = [conv bias, BN gamma, BN beta]
    # out_ref:   (N*H, Mout)     lane-dense fused output
    N, Hp, Kpad = xflat_ref.shape
    H = Hp - 2
    NH = N * H
    Cout = p_ref.shape[1]
    Mout = out_ref.shape[1]
    W = Mout // Cout

    x = xflat_ref[...]
    # im2row: three lane-aligned row-slabs (kh = 0,1,2) concatenated along lanes.
    xrows = jnp.concatenate(
        [x[:, kh:kh + H, :].reshape(NH, Kpad) for kh in range(3)], axis=1)  # (NH, 3*Kpad)

    # One fused MXU matmul: 1x1 branch + all nine 3x3 taps; output already
    # channel-concatenated and lane-dense.
    y = jnp.dot(xrows, b_ref[...], preferred_element_type=jnp.float32)      # (NH, Mout)
    bias_row = jnp.dot(ch_ref[0:1, :], pt_ref[...],
                       preferred_element_type=jnp.float32)                  # (1, Mout)
    y = y + bias_row

    # BatchNorm batch statistics (biased variance over N,H,W per channel).
    count = jnp.float32(NH * W)
    colsum = jnp.sum(y, axis=0, keepdims=True)                              # (1, Mout)
    mean_c = jnp.dot(colsum, p_ref[...],
                     preferred_element_type=jnp.float32) / count            # (1, Cout)
    mean_row = jnp.dot(mean_c, pt_ref[...],
                       preferred_element_type=jnp.float32)                  # (1, Mout)
    d = y - mean_row
    var_c = jnp.dot(jnp.sum(d * d, axis=0, keepdims=True), p_ref[...],
                    preferred_element_type=jnp.float32) / count             # (1, Cout)

    gamma = ch_ref[1:2, :]
    beta = ch_ref[2:3, :]
    scale_c = gamma * lax.rsqrt(var_c + EPS)                                # (1, Cout)
    shift_c = beta - mean_c * scale_c                                       # (1, Cout)
    scale_row = jnp.dot(scale_c, pt_ref[...], preferred_element_type=jnp.float32)
    shift_row = jnp.dot(shift_c, pt_ref[...], preferred_element_type=jnp.float32)

    # BN as a single FMA pass + ReLU, stored lane-dense (Mout % 128 == 0).
    out_ref[...] = jnp.maximum(y * scale_row + shift_row, 0.0)


def _round_up(x, m):
    return ((x + m - 1) // m) * m


def prepare_params(p, H, W):
    """One-time host-side repacking of module parameters for the fused kernel."""
    Cin, C1 = p['w1'].shape
    C3 = p['w3'].shape[2]
    Cout = C1 + C3
    Wp = W + 2
    Kpad = _round_up(Wp * Cin, 128)
    Mout = W * Cout

    w1 = np.asarray(p['w1'], np.float32)            # (Cin, C1)
    w3 = np.asarray(p['w3'], np.float32)            # (9, Cin, C3), tap = kh*3 + kw

    # Lowered / fused conv weight: y[r, w*Cout+co] = sum_K xrows[r, K] * B[K, w*Cout+co]
    B = np.zeros((3 * Kpad, Mout), np.float32)
    for kh in range(3):
        for kw in range(3):
            for w in range(W):
                r0 = kh * Kpad + (w + kw) * Cin
                c0 = w * Cout
                B[r0:r0 + Cin, c0 + C1:c0 + Cout] = w3[kh * 3 + kw]
                if kh == 1 and kw == 1:              # 1x1 branch reads only the center tap
                    B[r0:r0 + Cin, c0:c0 + C1] = w1

    P = np.tile(np.eye(Cout, dtype=np.float32), (W, 1))       # (Mout, Cout)
    PT = np.ascontiguousarray(P.T)                             # (Cout, Mout)
    ch = np.stack([
        np.concatenate([np.asarray(p['b1'])[0], np.asarray(p['b3'])[0]]),
        np.concatenate([np.asarray(p['g1'])[0], np.asarray(p['g3'])[0]]),
        np.concatenate([np.asarray(p['be1'])[0], np.asarray(p['be3'])[0]]),
    ]).astype(np.float32)                                      # (3, Cout)

    return dict(B=jnp.asarray(B), P=jnp.asarray(P), PT=jnp.asarray(PT),
                ch=jnp.asarray(ch), Cout=Cout, Kpad=Kpad, Mout=Mout)


def inception_forward(x_nchw, prep):
    """x_nchw: (N, Cin, H, W) float32 -> (N, C1+C3, H, W) float32."""
    N, Cin, H, W = x_nchw.shape
    Cout, Kpad, Mout = prep['Cout'], prep['Kpad'], prep['Mout']
    Hp, Wp = H + 2, W + 2

    # NCHW -> NHWC, pad=1 spatially, flatten each padded row to (W+2)*Cin lanes and
    # zero-pad the lane axis to a multiple of 128 so the in-kernel slab concat is aligned.
    # TODO(synk): fold this pad/transpose into the kernel's DMAs for large shapes.
    x = jnp.transpose(x_nchw, (0, 2, 3, 1))
    xpad = jnp.pad(x, ((0, 0), (1, 1), (1, 1), (0, 0)))
    xflat = xpad.reshape(N, Hp, Wp * Cin)
    xflat = jnp.pad(xflat, ((0, 0), (0, 0), (0, Kpad - Wp * Cin)))

    def full_spec(shape):
        nd = len(shape)
        return pl.BlockSpec(shape, lambda i, _nd=nd: (0,) * _nd)

    out2d = pl.pallas_call(
        inception_kernel,
        out_shape=jax.ShapeDtypeStruct((N * H, Mout), jnp.float32),
        grid=(1,),
        in_specs=[full_spec(xflat.shape), full_spec(prep['B'].shape),
                  full_spec(prep['P'].shape), full_spec(prep['PT'].shape),
                  full_spec(prep['ch'].shape)],
        out_specs=full_spec((N * H, Mout)),
        compiler_params=pltpu.CompilerParams(dimension_semantics=("arbitrary",)),
    )(xflat, prep['B'], prep['P'], prep['PT'], prep['ch'])

    # (N*H, W*Cout) is a free view of NHWC in HBM; reshape + transpose back to NCHW.
    out = out2d.reshape(N, H, W, Cout)
    return jnp.transpose(out, (0, 3, 1, 2))


# ---------------------------- pure-JAX reference -----------------------------
def reference_forward(x_nchw, p):
    x = jnp.transpose(x_nchw, (0, 2, 3, 1))  # NHWC
    dn = ('NHWC', 'HWIO', 'NHWC')

    def conv_bn_relu(inp, w_hwio, b, g, be, pad):
        y = lax.conv_general_dilated(inp, w_hwio, (1, 1),
                                     [(pad, pad), (pad, pad)],
                                     dimension_numbers=dn) + b
        m = jnp.mean(y, axis=(0, 1, 2), keepdims=True)
        v = jnp.mean((y - m) ** 2, axis=(0, 1, 2), keepdims=True)
        y = (y - m) * lax.rsqrt(v + EPS) * g + be
        return jnp.maximum(y, 0.0)

    Cin, C1 = p['w1'].shape
    C3 = p['w3'].shape[2]
    w1_hwio = p['w1'].reshape(1, 1, Cin, C1)
    w3_hwio = p['w3'].reshape(3, 3, Cin, C3)
    y1 = conv_bn_relu(x, w1_hwio, p['b1'][0], p['g1'][0], p['be1'][0], 0)
    y3 = conv_bn_relu(x, w3_hwio, p['b3'][0], p['g3'][0], p['be3'][0], 1)
    return jnp.transpose(jnp.concatenate([y1, y3], axis=-1), (0, 3, 1, 2))


if __name__ == "__main__":
    # Small shapes consistent with the module: N=2, Cin=4, H=W=16, f_1x1=8, f_3x3=8
    N, Cin, H, W = 2, 4, 16, 16
    C1, C3 = 8, 8

    key = jax.random.PRNGKey(0)
    ks = jax.random.split(key, 9)
    params = {
        'w1':  jax.random.normal(ks[0], (Cin, C1), jnp.float32) * 0.2,
        'b1':  jax.random.normal(ks[1], (1, C1), jnp.float32) * 0.1,
        'g1':  1.0 + 0.1 * jax.random.normal(ks[2], (1, C1), jnp.float32),
        'be1': 0.1 * jax.random.normal(ks[3], (1, C1), jnp.float32),
        'w3':  jax.random.normal(ks[4], (9, Cin, C3), jnp.float32) * 0.1,
        'b3':  jax.random.normal(ks[5], (1, C3), jnp.float32) * 0.1,
        'g3':  1.0 + 0.1 * jax.random.normal(ks[6], (1, C3), jnp.float32),
        'be3': 0.1 * jax.random.normal(ks[7], (1, C3), jnp.float32),
    }
    x = jax.random.normal(ks[8], (N, Cin, H, W), jnp.float32)

    prep = prepare_params(params, H, W)
    out = jax.block_until_ready(inception_forward(x, prep))
    ref = jax.block_until_ready(reference_forward(x, params))

    assert out.shape == (N, C1 + C3, H, W), out.shape
    np.testing.assert_allclose(np.asarray(out), np.asarray(ref), rtol=1e-4, atol=1e-4)
    print("KERNEL_OK")
</pallas_src>

<mosaic_0001>
module attributes {stable_mosaic.version = 11 : i64} {
  func.func @inception_kernel(%arg0: i32, %arg1: memref<2x18x128xf32, #tpu.memory_space<vmem>>, %arg2: memref<384x256xf32, #tpu.memory_space<vmem>>, %arg3: memref<256x16xf32, #tpu.memory_space<vmem>>, %arg4: memref<16x256xf32, #tpu.memory_space<vmem>>, %arg5: memref<3x16xf32, #tpu.memory_space<vmem>>, %arg6: memref<32x256xf32, #tpu.memory_space<vmem>>) attributes {dimension_semantics = [#tpu.dimension_semantics<arbitrary>], iteration_bounds = array<i64: 1>, scalar_prefetch = 0 : i64, scratch_operands = 0 : i64, tpu.core_type = #tpu.core_type<tc>, window_params = [{pipeline_mode = #tpu.pipeline_mode<synchronous>, transform_indices = @transform_0, window_bounds = array<i64: 2, 18, 128>}, {pipeline_mode = #tpu.pipeline_mode<synchronous>, transform_indices = @transform_1, window_bounds = array<i64: 384, 256>}, {pipeline_mode = #tpu.pipeline_mode<synchronous>, transform_indices = @transform_2, window_bounds = array<i64: 256, 16>}, {pipeline_mode = #tpu.pipeline_mode<synchronous>, transform_indices = @transform_3, window_bounds = array<i64: 16, 256>}, {pipeline_mode = #tpu.pipeline_mode<synchronous>, transform_indices = @transform_4, window_bounds = array<i64: 3, 16>}, {pipeline_mode = #tpu.pipeline_mode<synchronous>, transform_indices = @transform_5, window_bounds = array<i64: 32, 256>}]} {
    %c0 = arith.constant 0 : index
    %c0_0 = arith.constant 0 : index
    %c0_1 = arith.constant 0 : index
    %0 = vector.load %arg1[%c0, %c0_0, %c0_1] : memref<2x18x128xf32, #tpu.memory_space<vmem>>, vector<2x18x128xf32>
    %1 = vector.extract_strided_slice %0 {offsets = [0, 0, 0], sizes = [2, 16, 128], strides = [1, 1, 1]} : vector<2x18x128xf32> to vector<2x16x128xf32>
    %2 = vector.shape_cast %1 : vector<2x16x128xf32> to vector<32x128xf32>
    %3 = vector.extract_strided_slice %0 {offsets = [0, 1, 0], sizes = [2, 16, 128], strides = [1, 1, 1]} : vector<2x18x128xf32> to vector<2x16x128xf32>
    %4 = vector.shape_cast %3 : vector<2x16x128xf32> to vector<32x128xf32>
    %5 = vector.extract_strided_slice %0 {offsets = [0, 2, 0], sizes = [2, 16, 128], strides = [1, 1, 1]} : vector<2x18x128xf32> to vector<2x16x128xf32>
    %6 = vector.shape_cast %5 : vector<2x16x128xf32> to vector<32x128xf32>
    %7 = tpu.concatenate %2, %4, %6 in 1 : vector<32x128xf32>, vector<32x128xf32>, vector<32x128xf32> -> vector<32x384xf32>
    %c0_2 = arith.constant 0 : index
    %c0_3 = arith.constant 0 : index
    %8 = vector.load %arg2[%c0_2, %c0_3] : memref<384x256xf32, #tpu.memory_space<vmem>>, vector<384x256xf32>
    %cst = arith.constant dense<0.000000e+00> : vector<32x256xf32>
    %9 = tpu.matmul %7, %8, %cst {dimension_numbers = #tpu.dot_dimension_numbers<[1], [0], [0], [1], [0, 0, 1, 1], [], []>} : vector<32x384xf32>, vector<384x256xf32>, vector<32x256xf32> -> vector<32x256xf32>
    %c0_4 = arith.constant 0 : index
    %c0_5 = arith.constant 0 : index
    %10 = vector.load %arg5[%c0_4, %c0_5] : memref<3x16xf32, #tpu.memory_space<vmem>>, vector<1x16xf32>
    %c0_6 = arith.constant 0 : index
    %c0_7 = arith.constant 0 : index
    %11 = vector.load %arg4[%c0_6, %c0_7] : memref<16x256xf32, #tpu.memory_space<vmem>>, vector<16x256xf32>
    %cst_8 = arith.constant dense<0.000000e+00> : vector<1x256xf32>
    %12 = tpu.matmul %10, %11, %cst_8 {dimension_numbers = #tpu.dot_dimension_numbers<[1], [0], [0], [1], [0, 0, 1, 1], [], []>} : vector<1x16xf32>, vector<16x256xf32>, vector<1x256xf32> -> vector<1x256xf32>
    %13 = vector.broadcast %12 : vector<1x256xf32> to vector<32x256xf32>
    %14 = arith.addf %9, %13 : vector<32x256xf32>
    %cst_9 = arith.constant dense<0.000000e+00> : vector<256xf32>
    %15 = vector.multi_reduction <add>, %14, %cst_9 [0] : vector<32x256xf32> to vector<256xf32>
    %16 = vector.shape_cast %15 : vector<256xf32> to vector<1x256xf32>
    %c0_10 = arith.constant 0 : index
    %c0_11 = arith.constant 0 : index
    %17 = vector.load %arg3[%c0_10, %c0_11] : memref<256x16xf32, #tpu.memory_space<vmem>>, vector<256x16xf32>
    %cst_12 = arith.constant dense<0.000000e+00> : vector<1x16xf32>
    %18 = tpu.matmul %16, %17, %cst_12 {dimension_numbers = #tpu.dot_dimension_numbers<[1], [0], [0], [1], [0, 0, 1, 1], [], []>} : vector<1x256xf32>, vector<256x16xf32>, vector<1x16xf32> -> vector<1x16xf32>
    %cst_13 = arith.constant 5.120000e+02 : f32
    %19 = vector.broadcast %cst_13 : f32 to vector<1x16xf32>
    %20 = arith.divf %18, %19 : vector<1x16xf32>
    %c0_14 = arith.constant 0 : index
    %c0_15 = arith.constant 0 : index
    %21 = vector.load %arg4[%c0_14, %c0_15] : memref<16x256xf32, #tpu.memory_space<vmem>>, vector<16x256xf32>
    %cst_16 = arith.constant dense<0.000000e+00> : vector<1x256xf32>
    %22 = tpu.matmul %20, %21, %cst_16 {dimension_numbers = #tpu.dot_dimension_numbers<[1], [0], [0], [1], [0, 0, 1, 1], [], []>} : vector<1x16xf32>, vector<16x256xf32>, vector<1x256xf32> -> vector<1x256xf32>
    %23 = vector.broadcast %22 : vector<1x256xf32> to vector<32x256xf32>
    %24 = arith.subf %14, %23 : vector<32x256xf32>
    %25 = arith.mulf %24, %24 : vector<32x256xf32>
    %cst_17 = arith.constant dense<0.000000e+00> : vector<256xf32>
    %26 = vector.multi_reduction <add>, %25, %cst_17 [0] : vector<32x256xf32> to vector<256xf32>
    %27 = vector.shape_cast %26 : vector<256xf32> to vector<1x256xf32>
    %c0_18 = arith.constant 0 : index
    %c0_19 = arith.constant 0 : index
    %28 = vector.load %arg3[%c0_18, %c0_19] : memref<256x16xf32, #tpu.memory_space<vmem>>, vector<256x16xf32>
    %cst_20 = arith.constant dense<0.000000e+00> : vector<1x16xf32>
    %29 = tpu.matmul %27, %28, %cst_20 {dimension_numbers = #tpu.dot_dimension_numbers<[1], [0], [0], [1], [0, 0, 1, 1], [], []>} : vector<1x256xf32>, vector<256x16xf32>, vector<1x16xf32> -> vector<1x16xf32>
    %cst_21 = arith.constant 5.120000e+02 : f32
    %30 = vector.broadcast %cst_21 : f32 to vector<1x16xf32>
    %31 = arith.divf %29, %30 : vector<1x16xf32>
    %c1 = arith.constant 1 : index
    %c0_22 = arith.constant 0 : index
    %32 = vector.load %arg5[%c1, %c0_22] : memref<3x16xf32, #tpu.memory_space<vmem>>, vector<1x16xf32>
    %c2 = arith.constant 2 : index
    %c0_23 = arith.constant 0 : index
    %33 = vector.load %arg5[%c2, %c0_23] : memref<3x16xf32, #tpu.memory_space<vmem>>, vector<1x16xf32>
    %cst_24 = arith.constant 9.99999974E-6 : f32
    %34 = vector.broadcast %cst_24 : f32 to vector<1x16xf32>
    %35 = arith.addf %31, %34 : vector<1x16xf32>
    %36 = math.rsqrt %35 : vector<1x16xf32>
    %37 = arith.mulf %32, %36 : vector<1x16xf32>
    %38 = arith.mulf %20, %37 : vector<1x16xf32>
    %39 = arith.subf %33, %38 : vector<1x16xf32>
    %c0_25 = arith.constant 0 : index
    %c0_26 = arith.constant 0 : index
    %40 = vector.load %arg4[%c0_25, %c0_26] : memref<16x256xf32, #tpu.memory_space<vmem>>, vector<16x256xf32>
    %cst_27 = arith.constant dense<0.000000e+00> : vector<1x256xf32>
    %41 = tpu.matmul %37, %40, %cst_27 {dimension_numbers = #tpu.dot_dimension_numbers<[1], [0], [0], [1], [0, 0, 1, 1], [], []>} : vector<1x16xf32>, vector<16x256xf32>, vector<1x256xf32> -> vector<1x256xf32>
    %c0_28 = arith.constant 0 : index
    %c0_29 = arith.constant 0 : index
    %42 = vector.load %arg4[%c0_28, %c0_29] : memref<16x256xf32, #tpu.memory_space<vmem>>, vector<16x256xf32>
    %cst_30 = arith.constant dense<0.000000e+00> : vector<1x256xf32>
    %43 = tpu.matmul %39, %42, %cst_30 {dimension_numbers = #tpu.dot_dimension_numbers<[1], [0], [0], [1], [0, 0, 1, 1], [], []>} : vector<1x16xf32>, vector<16x256xf32>, vector<1x256xf32> -> vector<1x256xf32>
    %44 = vector.broadcast %41 : vector<1x256xf32> to vector<32x256xf32>
    %45 = arith.mulf %14, %44 : vector<32x256xf32>
    %46 = vector.broadcast %43 : vector<1x256xf32> to vector<32x256xf32>
    %47 = arith.addf %45, %46 : vector<32x256xf32>
    %cst_31 = arith.constant 0.000000e+00 : f32
    %48 = vector.broadcast %cst_31 : f32 to vector<32x256xf32>
    %49 = arith.maximumf %47, %48 : vector<32x256xf32>
    %c0_32 = arith.constant 0 : index
    %c0_33 = arith.constant 0 : index
    %50 = vector.load %arg6[%c0_32, %c0_33] : memref<32x256xf32, #tpu.memory_space<vmem>>, vector<32x256xf32>
    tpu.vector_store %arg6[%c0_32, %c0_33], %49 {strides = array<i32>} : memref<32x256xf32, #tpu.memory_space<vmem>>, vector<32x256xf32>,
    return
  }
  func.func @transform_0(%arg0: i32) -> (i32, i32, i32) {
    %c0_i32 = arith.constant 0 : i32
    %c0_i32_0 = arith.constant 0 : i32
    %c0_i32_1 = arith.constant 0 : i32
    %c0_i32_2 = arith.constant 0 : i32
    return %c0_i32, %c0_i32_0, %c0_i32_1 : i32, i32, i32
  }
  func.func @transform_1(%arg0: i32) -> (i32, i32) {
    %c0_i32 = arith.constant 0 : i32
    %c0_i32_0 = arith.constant 0 : i32
    %c0_i32_1 = arith.constant 0 : i32
    return %c0_i32, %c0_i32_0 : i32, i32
  }
  func.func @transform_2(%arg0: i32) -> (i32, i32) {
    %c0_i32 = arith.constant 0 : i32
    %c0_i32_0 = arith.constant 0 : i32
    %c0_i32_1 = arith.constant 0 : i32
    return %c0_i32, %c0_i32_0 : i32, i32
  }
  func.func @transform_3(%arg0: i32) -> (i32, i32) {
    %c0_i32 = arith.constant 0 : i32
    %c0_i32_0 = arith.constant 0 : i32
    %c0_i32_1 = arith.constant 0 : i32
    return %c0_i32, %c0_i32_0 : i32, i32
  }
  func.func @transform_4(%arg0: i32) -> (i32, i32) {
    %c0_i32 = arith.constant 0 : i32
    %c0_i32_0 = arith.constant 0 : i32
    %c0_i32_1 = arith.constant 0 : i32
    return %c0_i32, %c0_i32_0 : i32, i32
  }
  func.func @transform_5(%arg0: i32) -> (i32, i32) {
    %c0_i32 = arith.constant 0 : i32
    %c0_i32_0 = arith.constant 0 : i32
    %c0_i32_1 = arith.constant 0 : i32
    return %c0_i32, %c0_i32_0 : i32, i32
  }
}

</mosaic_0001>

<bundles_post_ra>
// kernel: tpu_custom_call.1
= control target key start
LH: loop header
LB: loop body
LE: loop exit
PB: predicated region body
PF: predicated region fallthrough
CT: control target
= control target key end

     0   :  { %10 = vsyncpa [#allocation3], 0  ;;  %s1678_s0 = inlined_call_operand.vmem [shape: f32[2,18,128], index: 0, kind: input, shape index: {}]   ;;  %s1679_s1 = inlined_call_operand.hbm [shape: f32[384,256], index: 1, kind: input, shape index: {}]   ;;  %s1680_s2 = inlined_call_operand.vmem [shape: f32[256,16], index: 2, kind: input, shape index: {}]   ;;  %s1681_s3 = inlined_call_operand.vmem [shape: f32[16,256], index: 3, kind: input, shape index: {}]   ;;  %s1682_s4 = inlined_call_operand.vmem [shape: f32[3,16], index: 4, kind: input, shape index: {}]   ;;  %s1683_s5 = inlined_call_operand.hbm [shape: f32[32,256], index: 5, kind: output, shape index: {}]  }
   0x1   :  { %11 = vsyncpa [#allocation4], 0  ;;  %s1289_s18 = smov [#allocation2]   ;;  %s1241_s22 = scalar_lea.hbm %s1679_s1, 12288 }
   0x2   :  { %s19_s19 = sshll.u32 %s1289_s18, 4  ;;  %p1242_p0 = scmp.ne.s32.totalorder %s1679_s1, %s1241_s22  ;;  %s20_s19 = int_to_ptr.vmem [resolvable:$true] %s19_s19 }
   0x3   :  { %p1245_p1 = scmp.lt.u32.totalorder %s1241_s22, %s1679_s1 }
   0x5   :  { %p1247_p2 = pnand %p1245_p1, %p1242_p0 }
   0x7   :  { %1250 = shalt.err (!%p1247_p2)
}
   0x8   :  { %s1251_s27 = scalar_lea.vmem %s20_s19, 12288  ;;  %p1256_p4 = scmp.lt.s32.totalorder %s20_s19, %s20_s19 }
   0x9   :  { %p1252_p3 = scmp.ne.s32.totalorder %s20_s19, %s1251_s27  ;;  %p1257_p5 = scmp.lt.s32.totalorder %s1251_s27, %s1251_s27 }
   0xb   :  { %p1258_p6 = por %p1257_p5, %p1256_p4 }
   0xd   :  { %p1259_p7 = pnand %p1258_p6, %p1252_p3 }
   0xf   :  { %1262 = shalt.err (!%p1259_p7)
}
  0x10   :  { %s1290_s28 = smov 256   ;;  %s1291_s29 = smov 16  }
  0x11   :  { %25 = dma.hbm_to_vmem [thread:$0]  %s1679_s1, 12288, %s20_s19, [#allocation3], %s1290_s28, %s1290_s28, %s1291_s29  }
  0x12   :  { %1285 = dma.done.wait [#allocation3], 12288  }
  0x13   :  { %1286 = vsyncadd [#allocation3], 4294955008  ;;  %v1292_v0 = vmov 0.0   ;;  %v78_v1 = vld [vmem:[#allocation2 + $0x8] sm:$0xff]  ;;  %v80_v2 = vld [vmem:[#allocation2 + $0x18] sm:$0xff]  ;;  %vm47_vm0 = vcmask 1046528  }
  0x14   :  { %246 = vmatprep.mubr.f32.mxu0 %v1292_v0  ;;  %v77_v3 = vld [vmem:[#allocation2] sm:$0xff]  ;;  %v1046_v4 = vpack.c.bf16 %v80_v2, %v78_v1  ;;  %v79_v5 = vld [vmem:[#allocation2 + $0x10] sm:$0xff]  ;;  %v82_v6 = vld [vmem:[#allocation2 + $0x28] sm:$0xff]  ;;  %vm62_vm1 = vcmask 1045504   ;;  %vm178_vm2 = vcmask 130048  }
  0x15   :  { %v84_v7 = vld [vmem:[#allocation2 + $0x38] sm:$0xff]  ;;  %v1048_v8 = vpack.c.bf16 %v79_v5, %v77_v3  ;;  %v81_v10 = vld [vmem:[#allocation2 + $0x20] sm:$0xff]  ;;  %v83_v11 = vld [vmem:[#allocation2 + $0x30] sm:$0xff] }
  0x16   :  { %v1050_v9 = vpack.c.bf16 %v84_v7, %v82_v6  ;;  %v86_v12 = vld [vmem:[#allocation2 + $0x48] sm:$0xff]  ;;  %1047 = vmatprep.subr.bf16.mxu1 %v1046_v4  ;;  %v88_v13 = vld [vmem:[#allocation2 + $0x58] sm:$0xff]  ;;  %v1052_v14 = vpack.c.bf16 %v83_v11, %v81_v10  ;;  %v85_v16 = vld [vmem:[#allocation2 + $0x40] sm:$0xff] }
  0x17   :  { %1049 = vmatpush1.bf16.msra.mxu1 %v1048_v8  ;;  %v1054_v15 = vpack.c.bf16 %v88_v13, %v86_v12  ;;  %v87_v17 = vld [vmem:[#allocation2 + $0x50] sm:$0xff]  ;;  %v90_v18 = vld [vmem:[#allocation2 + $0x68] sm:$0xff]  ;;  %v92_v19 = vld [vmem:[#allocation2 + $0x78] sm:$0xff] }
  0x18   :  { %1051 = vmatprep.subr.bf16.mxu1 %v1050_v9  ;;  %v1056_v20 = vpack.c.bf16 %v87_v17, %v85_v16  ;;  %v1058_v21 = vpack.c.bf16 %v92_v19, %v90_v18  ;;  %v89_v22 = vld [vmem:[#allocation2 + $0x60] sm:$0xff]  ;;  %v91_v23 = vld [vmem:[#allocation2 + $0x70] sm:$0xff]  ;;  %v94_v24 = vld [vmem:[#allocation2 + $0x88] sm:$0xff] }
  0x19   :  { %v96_v25 = vld [vmem:[#allocation2 + $0x98] sm:$0xff]  ;;  %v1060_v26 = vpack.c.bf16 %v91_v23, %v89_v22  ;;  %v93_v28 = vld [vmem:[#allocation2 + $0x80] sm:$0xff]  ;;  %v95_v29 = vld [vmem:[#allocation2 + $0x90] sm:$0xff] }
  0x1a   :  { %v1062_v27 = vpack.c.bf16 %v96_v25, %v94_v24  ;;  %v98_v30 = vld [vmem:[#allocation2 + $0xa8] sm:$0xff]  ;;  %v100_v31 = vld [vmem:[#allocation2 + $0xb8] sm:$0xff]  ;;  %v1064_v32 = vpack.c.bf16 %v95_v29, %v93_v28  ;;  %v97_v34 = vld [vmem:[#allocation2 + $0xa0] sm:$0xff] }
  0x1b   :  { %1053 = vmatpush1.bf16.msra.mxu1 %v1052_v14  ;;  %v1066_v33 = vpack.c.bf16 %v100_v31, %v98_v30  ;;  %v99_v35 = vld [vmem:[#allocation2 + $0xb0] sm:$0xff]  ;;  %v102_v36 = vld [vmem:[#allocation2 + $0xc8] sm:$0xff]  ;;  %v104_v37 = vld [vmem:[#allocation2 + $0xd8] sm:$0xff] }
  0x1c   :  { %1055 = vmatprep.subr.bf16.mxu1 %v1054_v15  ;;  %v1068_v38 = vpack.c.bf16 %v99_v35, %v97_v34  ;;  %v101_v39 = vld [vmem:[#allocation2 + $0xc0] sm:$0xff]  ;;  %v1070_v40 = vpack.c.bf16 %v104_v37, %v102_v36  ;;  %v103_v41 = vld [vmem:[#allocation2 + $0xd0] sm:$0xff]  ;;  %v1348_v43 = vld [vmem:[%s1678_s0 + $0x8] sm:$0xff] }
  0x1d   :  { %v1343_v42 = vld [vmem:[%s1678_s0] sm:$0xff]  ;;  %v106_v44 = vld [vmem:[#allocation2 + $0xe8] sm:$0xff]  ;;  %v108_v45 = vld [vmem:[#allocation2 + $0xf8] sm:$0xff]  ;;  %v49_v47 = vrot.slane %v1348_v43, 1  ;;  %v64_v49 = vrot.slane %v1348_v43, 2  ;;  %v1072_v50 = vpack.c.bf16 %v103_v41, %v101_v39 }
  0x1e   :  { %v48_v46 = vrot.slane %v1343_v42, 1  ;;  %v63_v48 = vrot.slane %v1343_v42, 2  ;;  %v1074_v52 = vpack.c.bf16 %v108_v45, %v106_v44  ;;  %v105_v53 = vld [vmem:[#allocation2 + $0xe0] sm:$0xff]  ;;  %v107_v54 = vld [vmem:[#allocation2 + $0xf0] sm:$0xff]  ;;  %v110_v56 = vld [vmem:[#allocation2 + $0x108] sm:$0xff] }
  0x1f   :  { %1057 = vmatpush1.bf16.msra.mxu1 %v1056_v20  ;;  %v112_v57 = vld [vmem:[#allocation2 + $0x118] sm:$0xff]  ;;  %v1076_v58 = vpack.c.bf16 %v107_v54, %v105_v53  ;;  %v109_v60 = vld [vmem:[#allocation2 + $0x100] sm:$0xff]  ;;  %v111_v61 = vld [vmem:[#allocation2 + $0x110] sm:$0xff] }
  0x20   :  { %1059 = vmatprep.subr.bf16.mxu1 %v1058_v21  ;;  %v50_v51 = vsel %vm47_vm0, %v48_v46, %v49_v47  ;;  %v1360_v55 = vsel %vm62_vm1, %v63_v48, %v64_v49  ;;  %v1078_v59 = vpack.c.bf16 %v112_v57, %v110_v56  ;;  %v114_v62 = vld [vmem:[#allocation2 + $0x128] sm:$0xff]  ;;  %v116_v63 = vld [vmem:[#allocation2 + $0x138] sm:$0xff]  ;;  %v1080_v1 = vpack.c.bf16 %v111_v61, %v109_v60  ;;  %v113_v2 = vld [vmem:[#allocation2 + $0x120] sm:$0xff] }
  0x21   :  { %325 = vmatprep.mubr.f32.mxu1 %v50_v51  ;;  %v175_v3 = vld [vmem:[%s1681_s3 + $0x8] sm:$0xff]  ;;  %v177_v4 = vld [vmem:[%s1681_s3 + $0x18] sm:$0xff]  ;;  %v1082_v5 = vpack.c.bf16 %v116_v63, %v114_v62  ;;  %v115_v6 = vld [vmem:[#allocation2 + $0x130] sm:$0xff] }
  0x22   :  { %v1368_v7 = vpack.c.bf16 %v177_v4, %v175_v3  ;;  %v174_v8 = vld [vmem:[%s1681_s3] sm:$0xff]  ;;  %v176_v9 = vld [vmem:[%s1681_s3 + $0x10] sm:$0xff]  ;;  %v118_v10 = vld [vmem:[#allocation2 + $0x148] sm:$0xff]  ;;  %v1084_v13 = vpack.c.bf16 %v115_v6, %v113_v2 }
  0x23   :  { %1061 = vmatpush1.bf16.msra.mxu1 %v1060_v26  ;;  %v120_v11 = vld [vmem:[#allocation2 + $0x158] sm:$0xff]  ;;  %v1376_v12 = vpack.c.bf16 %v176_v9, %v174_v8  ;;  %v173_v14 = vld [vmem:[%s1682_s4] sm:$0x1]  ;;  %v117_v16 = vld [vmem:[#allocation2 + $0x140] sm:$0xff] }
  0x24   :  { %1063 = vmatprep.subr.bf16.mxu1 %v1062_v27  ;;  %1043 = vmatprep.subr.bf16.mxu0 %v1368_v7  ;;  %v1086_v15 = vpack.c.bf16 %v120_v11, %v118_v10  ;;  %v119_v17 = vld [vmem:[#allocation2 + $0x150] sm:$0xff]  ;;  %v122_v18 = vld [vmem:[#allocation2 + $0x168] sm:$0xff]  ;;  %v124_v19 = vld [vmem:[#allocation2 + $0x178] sm:$0xff] }
  0x25   :  { %1045 = vmatpush1.bf16.msra.mxu0 %v1376_v12  ;;  %v1088_v20 = vpack.c.bf16 %v119_v17, %v117_v16  ;;  %v1090_v21 = vpack.c.bf16 %v124_v19, %v122_v18  ;;  %v121_v22 = vld [vmem:[#allocation2 + $0x160] sm:$0xff]  ;;  %v123_v23 = vld [vmem:[#allocation2 + $0x170] sm:$0xff]  ;;  %v126_v24 = vld [vmem:[#allocation2 + $0x188] sm:$0xff] }
  0x26   :  { %v128_v25 = vld [vmem:[#allocation2 + $0x198] sm:$0xff]  ;;  %v1092_v26 = vpack.c.bf16 %v123_v23, %v121_v22  ;;  %v125_v28 = vld [vmem:[#allocation2 + $0x180] sm:$0xff]  ;;  %v127_v29 = vld [vmem:[#allocation2 + $0x190] sm:$0xff] }
  0x27   :  { %1065 = vmatpush1.bf16.msra.mxu1 %v1064_v32  ;;  %v1094_v27 = vpack.c.bf16 %v128_v25, %v126_v24  ;;  %v130_v30 = vld [vmem:[#allocation2 + $0x1a8] sm:$0xff]  ;;  %v132_v31 = vld [vmem:[#allocation2 + $0x1b8] sm:$0xff]  ;;  %v1096_v32 = vpack.c.bf16 %v127_v29, %v125_v28  ;;  %v129_v34 = vld [vmem:[#allocation2 + $0x1a0] sm:$0xff] }
  0x28   :  { %1067 = vmatprep.subr.bf16.mxu1 %v1066_v33  ;;  %968 = vmatmul.mubr.msk.f32.vlgmr.msra.gmra.mrb[0].mxu0 %vm178_vm2, %v173_v14  ;;  %v1098_v33 = vpack.c.bf16 %v132_v31, %v130_v30  ;;  %v131_v35 = vld [vmem:[#allocation2 + $0x1b0] sm:$0xff]  ;;  %v134_v36 = vld [vmem:[#allocation2 + $0x1c8] sm:$0xff]  ;;  %v136_v37 = vld [vmem:[#allocation2 + $0x1d8] sm:$0xff] }
  0x29   :  { %v1102_v39 = vpack.c.bf16 %v136_v37, %v134_v36  ;;  %v135_v41 = vld [vmem:[#allocation2 + $0x1d0] sm:$0xff]  ;;  %v138_v44 = vld [vmem:[#allocation2 + $0x1e8] sm:$0xff]  ;;  %v140_v45 = vld [vmem:[#allocation2 + $0x1f8] sm:$0xff] }
  0x2a   :  { %v1106_v48 = vpack.c.bf16 %v140_v45, %v138_v44  ;;  %v139_v51 = vld [vmem:[#allocation2 + $0x1f0] sm:$0xff]  ;;  %v144_v53 = vld [vmem:[#allocation2 + $0x218] sm:$0xff]  ;;  %v1387_v54 = vld [vmem:[%s1678_s0 + $0x10] sm:$0x3] }
  0x2b   :  { %1069 = vmatpush1.bf16.msra.mxu1 %v1068_v38  ;;  %v1100_v38 = vpack.c.bf16 %v131_v35, %v129_v34  ;;  %v146_v60 = vld [vmem:[#allocation2 + $0x228] sm:$0xff]  ;;  %v51_v61 = vrot.slane %v1387_v54, 1  ;;  %v148_v62 = vld [vmem:[#allocation2 + $0x238] sm:$0xff]  ;;  %v145_v4 = vld [vmem:[#allocation2 + $0x220] sm:$0xff] }
  0x2c   :  { %1071 = vmatprep.subr.bf16.mxu1 %v1070_v40  ;;  %v133_v40 = vld [vmem:[#allocation2 + $0x1c0] sm:$0xff]  ;;  %v1393_v63 = vld [vmem:[%s1678_s0 + $0x18] sm:$0xff]  ;;  %v1114_v3 = vpack.c.bf16 %v148_v62, %v146_v60  ;;  %v152_v11 = vld [vmem:[#allocation2 + $0x258] sm:$0xff] }
  0x2d   :  { %v1104_v46 = vpack.c.bf16 %v135_v41, %v133_v40  ;;  %v52_v6 = vsel %vm47_vm0, %v49_v47, %v51_v61  ;;  %v53_v8 = vrot.slane %v1393_v63, 1  ;;  %v150_v10 = vld [vmem:[#allocation2 + $0x248] sm:$0xff]  ;;  %v149_v16 = vld [vmem:[#allocation2 + $0x240] sm:$0xff]  ;;  %v151_v47 = vld [vmem:[#allocation2 + $0x250] sm:$0xff] }
  0x2e   :  { %v154_v19 = vld [vmem:[#allocation2 + $0x268] sm:$0xff]  ;;  %v153_v22 = vld [vmem:[#allocation2 + $0x260] sm:$0xff]  ;;  %v155_v23 = vld [vmem:[#allocation2 + $0x270] sm:$0xff] }
  0x2f   :  { %1073 = vmatpush1.bf16.msra.mxu1 %v1072_v50  ;;  %v137_v50 = vld [vmem:[#allocation2 + $0x1e0] sm:$0xff]  ;;  %v158_v25 = vld [vmem:[#allocation2 + $0x288] sm:$0xff]  ;;  %v159_v30 = vld [vmem:[#allocation2 + $0x290] sm:$0xff] }
  0x30   :  { %1075 = vmatprep.subr.bf16.mxu1 %v1074_v52  ;;  %v142_v52 = vld [vmem:[#allocation2 + $0x208] sm:$0xff]  ;;  %v1108_v56 = vpack.c.bf16 %v139_v51, %v137_v50  ;;  %v157_v29 = vld [vmem:[#allocation2 + $0x280] sm:$0xff]  ;;  %v163_v36 = vld [vmem:[#allocation2 + $0x2b0] sm:$0xff] }
  0x31   :  { %v1110_v57 = vpack.c.bf16 %v144_v53, %v142_v52  ;;  %v162_v31 = vld [vmem:[#allocation2 + $0x2a8] sm:$0xff]  ;;  %v161_v35 = vld [vmem:[#allocation2 + $0x2a0] sm:$0xff]  ;;  %v167_v44 = vld [vmem:[#allocation2 + $0x2d0] sm:$0xff] }
  0x32   :  { %v166_v37 = vld [vmem:[#allocation2 + $0x2c8] sm:$0xff]  ;;  %v165_v41 = vld [vmem:[#allocation2 + $0x2c0] sm:$0xff]  ;;  %v171_v52 = vld [vmem:[#allocation2 + $0x2f0] sm:$0xff] }
  0x33   :  { %1077 = vmatpush1.bf16.msra.mxu1 %v1076_v58  ;;  %v141_v58 = vld [vmem:[#allocation2 + $0x200] sm:$0xff]  ;;  %v170_v45 = vld [vmem:[#allocation2 + $0x2e8] sm:$0xff]  ;;  %v457_v62 = vld [vmem:[%s1680_s2] sm:$0xff] }
  0x34   :  { %1079 = vmatprep.subr.bf16.mxu1 %v1078_v59  ;;  %v143_v59 = vld [vmem:[#allocation2 + $0x210] sm:$0xff]  ;;  %v169_v51 = vld [vmem:[#allocation2 + $0x2e0] sm:$0xff] }
  0x35   :  { %v1112_v2 = vpack.c.bf16 %v143_v59, %v141_v58  ;;  %v1140_v53 = vpack.c.bf16 %v171_v52, %v169_v51  ;;  %v68_v58 = vrot.slane %v1393_v63, 2 }
  0x37   :  { %1081 = vmatpush1.bf16.msra.mxu1 %v1080_v1  ;;  %v1398_v1 = vld [vmem:[%s1678_s0 + $0x20] sm:$0xff] }
  0x38   :  { %1083 = vmatprep.subr.bf16.mxu1 %v1082_v5  ;;  %v147_v5 = vld [vmem:[#allocation2 + $0x230] sm:$0xff]  ;;  %v54_v9 = vrot.slane %v1398_v1, 1  ;;  %v69_v59 = vrot.slane %v1398_v1, 2 }
  0x39   :  { %v1116_v14 = vpack.c.bf16 %v147_v5, %v145_v4  ;;  %v459_v5 = vld [vmem:[%s1680_s2 + $0x10] sm:$0xff] }
  0x3a   :  { %v55_v17 = vsel %vm47_vm0, %v53_v8, %v54_v9  ;;  %v70_v60 = vsel %vm62_vm1, %v68_v58, %v69_v59 }
  0x3b   :  { %1085 = vmatpush1.bf16.msra.mxu1 %v1084_v13  ;;  %v1408_v13 = vld [vmem:[%s1678_s0 + $0x28] sm:$0x3] }
  0x3c   :  { %1087 = vmatprep.subr.bf16.mxu1 %v1086_v15  ;;  %v1118_v15 = vpack.c.bf16 %v152_v11, %v150_v10  ;;  %v56_v18 = vrot.slane %v1408_v13, 1  ;;  %v71_v61 = vrot.slane %v1408_v13, 2  ;;  %v478_v10 = vld [vmem:[%s1680_s2 + $0xa8] sm:$0xff]  ;;  %v461_v13 = vld [vmem:[%s1680_s2 + $0x20] sm:$0xff] }
  0x3e   :  { %v57_v24 = vsel %vm47_vm0, %v54_v9, %v56_v18  ;;  %v477_v9 = vld [vmem:[%s1680_s2 + $0xa0] sm:$0xff]  ;;  %v463_v18 = vld [vmem:[%s1680_s2 + $0x30] sm:$0xff] }
  0x3f   :  { %1089 = vmatpush1.bf16.msra.mxu1 %v1088_v20  ;;  %v156_v20 = vld [vmem:[#allocation2 + $0x278] sm:$0xff]  ;;  %v1473_v11 = vpack.c.bf16 %v478_v10, %v477_v9 }
  0x40   :  { %1091 = vmatprep.subr.bf16.mxu1 %v1090_v21  ;;  %v1120_v21 = vpack.c.bf16 %v151_v47, %v149_v16  ;;  %v479_v16 = vld [vmem:[%s1680_s2 + $0xb0] sm:$0xff]  ;;  %v480_v47 = vld [vmem:[%s1680_s2 + $0xb8] sm:$0xff] }
  0x43   :  { %1093 = vmatpush1.bf16.msra.mxu1 %v1092_v26  ;;  %v160_v26 = vld [vmem:[#allocation2 + $0x298] sm:$0xff] }
  0x44   :  { %1095 = vmatprep.subr.bf16.mxu1 %v1094_v27  ;;  %v1124_v27 = vpack.c.bf16 %v155_v23, %v153_v22  ;;  %v1126_v28 = vpack.c.bf16 %v160_v26, %v158_v25  ;;  %v465_v23 = vld [vmem:[%s1680_s2 + $0x40] sm:$0xff]  ;;  %v483_v26 = vld [vmem:[%s1680_s2 + $0xd0] sm:$0xff] }
  0x47   :  { %1097 = vmatpush1.bf16.msra.mxu1 %v1096_v32  ;;  %v164_v32 = vld [vmem:[#allocation2 + $0x2b8] sm:$0xff] }
  0x48   :  { %1099 = vmatprep.subr.bf16.mxu1 %v1098_v33  ;;  %v1128_v33 = vpack.c.bf16 %v159_v30, %v157_v29  ;;  %v1130_v34 = vpack.c.bf16 %v164_v32, %v162_v31  ;;  %v467_v29 = vld [vmem:[%s1680_s2 + $0x50] sm:$0xff]  ;;  %v468_v30 = vld [vmem:[%s1680_s2 + $0x58] sm:$0xff]  ;;  %v485_v32 = vld [vmem:[%s1680_s2 + $0xe0] sm:$0xff] }
  0x49   :  { %v1535_v31 = vpack.c.bf16 %v468_v30, %v467_v29 }
  0x4b   :  { %1101 = vmatpush1.bf16.msra.mxu1 %v1100_v38  ;;  %v168_v38 = vld [vmem:[#allocation2 + $0x2d8] sm:$0xff] }
  0x4c   :  { %1103 = vmatprep.subr.bf16.mxu1 %v1102_v39  ;;  %v1132_v39 = vpack.c.bf16 %v163_v36, %v161_v35  ;;  %v1134_v40 = vpack.c.bf16 %v168_v38, %v166_v37  ;;  %v469_v35 = vld [vmem:[%s1680_s2 + $0x60] sm:$0xff]  ;;  %v470_v36 = vld [vmem:[%s1680_s2 + $0x68] sm:$0xff]  ;;  %v487_v38 = vld [vmem:[%s1680_s2 + $0xf0] sm:$0xff] }
  0x4d   :  { %v1553_v37 = vpack.c.bf16 %v470_v36, %v469_v35 }
  0x4f   :  { %1105 = vmatpush1.bf16.msra.mxu1 %v1104_v46  ;;  %v172_v46 = vld [vmem:[#allocation2 + $0x2f8] sm:$0xff] }
  0x50   :  { %1107 = vmatprep.subr.bf16.mxu1 %v1106_v48  ;;  %v1136_v48 = vpack.c.bf16 %v167_v44, %v165_v41  ;;  %v1138_v50 = vpack.c.bf16 %v172_v46, %v170_v45  ;;  %v472_v44 = vld [vmem:[%s1680_s2 + $0x78] sm:$0xff] }
  0x53   :  { %1109 = vmatpush1.bf16.msra.mxu1 %v1108_v56  ;;  %v66_v56 = vrot.slane %v1387_v54, 2 }
  0x54   :  { %1111 = vmatprep.subr.bf16.mxu1 %v1110_v57 }
  0x55   :  { %v67_v57 = vsel %vm62_vm1, %v64_v49, %v66_v56  ;;  %v474_v49 = vld [vmem:[%s1680_s2 + $0x88] sm:$0xff] }
  0x56   :  { %326 = vmatmul.mubr.f32.vlgmr.msra.gmra.mrb[0].mxu1 %v1343_v42  ;;  %v1122_v42 = vpack.c.bf16 %v156_v20, %v154_v19  ;;  %v464_v19 = vld [vmem:[%s1680_s2 + $0x38] sm:$0xff] }
  0x57   :  { %1113 = vmatpush1.bf16.msra.mxu1 %v1112_v2  ;;  %331 = vmatprep.mubr.f32.mxu1 %v52_v6  ;;  %v475_v2 = vld [vmem:[%s1680_s2 + $0x90] sm:$0xff]  ;;  %v460_v6 = vld [vmem:[%s1680_s2 + $0x18] sm:$0xff]  ;;  %v1499_v20 = vpack.c.bf16 %v464_v19, %v463_v18 }
  0x58   :  { %1115 = vmatprep.subr.bf16.mxu1 %v1114_v3  ;;  %v476_v3 = vld [vmem:[%s1680_s2 + $0x98] sm:$0xff]  ;;  %v1463_v8 = vpack.c.bf16 %v460_v6, %v459_v5 }
  0x59   :  { %v1455_v4 = vpack.c.bf16 %v476_v3, %v475_v2 }
  0x5a   :  { %332 = vmatmul.mubr.f32.gmra.mrb[2].mxu1 %v1348_v43  ;;  %v473_v43 = vld [vmem:[%s1680_s2 + $0x80] sm:$0xff] }
  0x5b   :  { %1117 = vmatpush1.bf16.msra.mxu1 %v1116_v14  ;;  %337 = vmatprep.mubr.f32.mxu1 %v55_v17  ;;  %v1437_v54 = vpack.c.bf16 %v474_v49, %v473_v43  ;;  %v462_v14 = vld [vmem:[%s1680_s2 + $0x28] sm:$0xff]  ;;  %v1491_v17 = vpack.c.bf16 %v480_v47, %v479_v16 }
  0x5c   :  { %1119 = vmatprep.subr.bf16.mxu1 %v1118_v15  ;;  %v1481_v15 = vpack.c.bf16 %v462_v14, %v461_v13 }
  0x5d   :  { %1143 = vmatprep.subr.bf16.mxu0 %v1437_v54 }
  0x5e   :  { %338 = vmatmul.mubr.f32.gmra.mrb[4].mxu1 %v1393_v63  ;;  %v458_v63 = vld [vmem:[%s1680_s2 + $0x8] sm:$0xff] }
  0x5f   :  { %1121 = vmatpush1.bf16.msra.mxu1 %v1120_v21  ;;  %343 = vmatprep.mubr.f32.mxu1 %v57_v24  ;;  %v481_v21 = vld [vmem:[%s1680_s2 + $0xc0] sm:$0xff]  ;;  %v466_v24 = vld [vmem:[%s1680_s2 + $0x48] sm:$0xff] }
  0x60   :  { %1123 = vmatprep.subr.bf16.mxu1 %v1122_v42  ;;  %v482_v42 = vld [vmem:[%s1680_s2 + $0xc8] sm:$0xff]  ;;  %v1517_v25 = vpack.c.bf16 %v466_v24, %v465_v23 }
  0x61   :  { %v1509_v22 = vpack.c.bf16 %v482_v42, %v481_v21 }
  0x62   :  { %344 = vmatmul.mubr.f32.gmra.mrb[6].mxu1 %v1398_v1  ;;  %v1446_v1 = vpack.c.bf16 %v458_v63, %v457_v62 }
  0x63   :  { %1125 = vmatpush1.bf16.msra.mxu1 %v1124_v27  ;;  %414 = vmatprep.mubr.f32.mxu1 %v1292_v0  ;;  %v484_v27 = vld [vmem:[%s1680_s2 + $0xd8] sm:$0xff] }
  0x64   :  { %1127 = vmatprep.subr.bf16.mxu1 %v1126_v28  ;;  %1145 = vmatpush3.bf16.msra.mxu0 %v1446_v1  ;;  %v1527_v28 = vpack.c.bf16 %v484_v27, %v483_v26 }
  0x65   :  { %1147 = vmatprep.subr.bf16.mxu0 %v1455_v4 }
  0x67   :  { %1129 = vmatpush1.bf16.msra.mxu1 %v1128_v33  ;;  %v486_v33 = vld [vmem:[%s1680_s2 + $0xe8] sm:$0xff] }
  0x68   :  { %1131 = vmatprep.subr.bf16.mxu1 %v1130_v34  ;;  %1149 = vmatpush3.bf16.msra.mxu0 %v1463_v8  ;;  %v1545_v34 = vpack.c.bf16 %v486_v33, %v485_v32 }
  0x69   :  { %1151 = vmatprep.subr.bf16.mxu0 %v1473_v11 }
  0x6b   :  { %1133 = vmatpush1.bf16.msra.mxu1 %v1132_v39  ;;  %v488_v39 = vld [vmem:[%s1680_s2 + $0xf8] sm:$0xff] }
  0x6c   :  { %1135 = vmatprep.subr.bf16.mxu1 %v1134_v40  ;;  %1153 = vmatpush3.bf16.msra.mxu0 %v1481_v15  ;;  %v471_v40 = vld [vmem:[%s1680_s2 + $0x70] sm:$0xff]  ;;  %v1566_v41 = vpack.c.bf16 %v488_v39, %v487_v38 }
  0x6d   :  { %1155 = vmatprep.subr.bf16.mxu0 %v1491_v17  ;;  %v1571_v45 = vpack.c.bf16 %v472_v44, %v471_v40 }
  0x6f   :  { %1137 = vmatpush1.bf16.msra.mxu1 %v1136_v48 }
  0x70   :  { %1139 = vmatprep.subr.bf16.mxu1 %v1138_v50  ;;  %1157 = vmatpush3.bf16.msra.mxu0 %v1499_v20  ;;  %v253_v50 = vlaneseq }
  0x71   :  { %1159 = vmatprep.subr.bf16.mxu0 %v1509_v22 }
  0x72   :  { %v254_v51 = vshrl.u32 %v253_v50, 7 }
  0x73   :  { %1141 = vmatpush1.bf16.msra.mxu1 %v1140_v53 }
  0x74   :  { %1161 = vmatpush3.bf16.msra.mxu0 %v1517_v25  ;;  %v1576_v52 = vsub.s32 0, %v254_v51 }
  0x75   :  { %1163 = vmatprep.subr.bf16.mxu0 %v1527_v28 }
  0x76   :  { %415 = vmatmul.mubr.f32.vlgmr.msra.gmra.mrb[0].mxu1 %v1360_v55  ;;  %v72_v55 = vsel %vm62_vm1, %v69_v59, %v71_v61 }
  0x77   :  { %420 = vmatprep.mubr.f32.mxu1 %v1292_v0 }
  0x78   :  { %1165 = vmatpush3.bf16.msra.mxu0 %v1535_v31 }
  0x79   :  { %1167 = vmatprep.subr.bf16.mxu0 %v1545_v34 }
  0x7a   :  { %421 = vmatmul.mubr.f32.gmra.mrb[2].mxu1 %v67_v57 }
  0x7b   :  { %426 = vmatprep.mubr.f32.mxu1 %v1292_v0 }
  0x7c   :  { %1169 = vmatpush3.bf16.msra.mxu0 %v1553_v37 }
  0x7d   :  { %1171 = vmatprep.subr.bf16.mxu0 %v1566_v41 }
  0x7e   :  { %427 = vmatmul.mubr.f32.gmra.mrb[4].mxu1 %v70_v60 }
  0x7f   :  { %432 = vmatprep.mubr.f32.mxu1 %v1292_v0 }
  0x80   :  { %1173 = vmatpush3.bf16.msra.mxu0 %v1571_v45 }
  0x81   :  { %1175 = vmatprep.subr.bf16.mxu0 %v1368_v7 }
  0x82   :  { %433 = vmatmul.mubr.f32.gmra.mrb[6].mxu1 %v72_v55 }
  0xfb   :  { %v248_v46 = vpop.f32.mrb[0].mxu0 }
  0xfc   :  { %v250_v48 = vpop.f32.mrb[1].mxu0  ;;  %v256_v53 = vrot.slane %v248_v46, %v1576_v52 }
  0xfd   :  { %v260_v56 = vrot.slane %v250_v48, %v1576_v52 }
 0x149   :  { %v416_v57 = vpop.f32.mrb[0].mxu1 }
 0x14a   :  { %v1580_v58 = vadd.f32 %v416_v57, %v256_v53  ;;  %v418_v59 = vpop.f32.mrb[1].mxu1 }
 0x14b   :  { %v1582_v60 = vadd.f32 %v418_v59, %v260_v56 }
 0x14d   :  { %v422_v61 = vpop.f32.mrb[2].mxu1 }
 0x14e   :  { %v1584_v55 = vadd.f32 %v422_v61, %v256_v53  ;;  %v424_v43 = vpop.f32.mrb[3].mxu1 }
 0x14f   :  { %v1586_v49 = vadd.f32 %v424_v43, %v260_v56 }
 0x150   :  { %v439_v5 = vadd.f32 %v1584_v55, %v1580_v58 }
 0x151   :  { %v428_v62 = vpop.f32.mrb[4].mxu1  ;;  %v448_v6 = vadd.f32 %v1586_v49, %v1582_v60 }
 0x152   :  { %v1588_v63 = vadd.f32 %v428_v62, %v256_v53  ;;  %v430_v2 = vpop.f32.mrb[5].mxu1 }
 0x153   :  { %v1590_v3 = vadd.f32 %v430_v2, %v260_v56 }
 0x154   :  { %v440_v10 = vadd.f32 %v1588_v63, %v439_v5 }
 0x155   :  { %v434_v9 = vpop.f32.mrb[6].mxu1  ;;  %v449_v16 = vadd.f32 %v1590_v3, %v448_v6 }
 0x156   :  { %v1597_v13 = vadd.f32 %v434_v9, %v256_v53  ;;  %v436_v14 = vpop.f32.mrb[7].mxu1 }
 0x157   :  { %v1600_v47 = vadd.f32 %v436_v14, %v260_v56 }
 0x158   :  { %v441_v18 = vadd.f32 %v1597_v13, %v440_v10 }
 0x159   :  { %v450_v19 = vadd.f32 %v1600_v47, %v449_v16 }
 0x15a   :  { %v442_v21 = vrot.slane %v441_v18, 4 }
 0x15b   :  { %v451_v42 = vrot.slane %v450_v19, 4 }
 0x15c   :  { %v443_v23 = vadd.f32 %v442_v21, %v441_v18 }
 0x15d   :  { %v452_v24 = vadd.f32 %v451_v42, %v450_v19 }
 0x15e   :  { %v444_v26 = vrot.slane %v443_v23, 2 }
 0x15f   :  { %v453_v27 = vrot.slane %v452_v24, 2 }
 0x160   :  { %v445_v29 = vadd.f32 %v444_v26, %v443_v23 }
 0x161   :  { %v454_v30 = vadd.f32 %v453_v27, %v452_v24 }
 0x162   :  { %v446_v32 = vrot.slane %v445_v29, 1 }
 0x163   :  { %v455_v33 = vrot.slane %v454_v30, 1 }
 0x164   :  { %v447_v36 = vadd.f32 %v446_v32, %v445_v29 }
 0x165   :  { %v456_v35 = vadd.f32 %v455_v33, %v454_v30  ;;  %v748_v30 = vld [vmem:[%s1682_s4 + $0x1] sm:$0x1] }
 0x167   :  { %553 = vmatprep.mubr.f32.mxu0 %v456_v35  ;;  %v749_v35 = vld [vmem:[%s1682_s4 + $0x2] sm:$0x1]  ;;  %s1293_s4 = smov [#allocation5]  }
 0x168   :  { %554 = vmatmul.mubr.f32.vlgmr.msra.gmra.mrb[2].mxu0 %v447_v36  ;;  %s956_s17 = sshll.u32 %s1293_s4, 4  ;;  %s957_s17 = int_to_ptr.vmem [resolvable:$true] %s956_s17 }
 0x169   :  { %1177 = vmatpush1.bf16.msra.mxu0 %v1376_v12  ;;  %628 = vmatprep.mubr.f32.mxu0 %v1292_v0  ;;  %s1263_s18 = scalar_lea.vmem %s957_s17, 1024  ;;  %p1268_p9 = scmp.lt.s32.totalorder %s957_s17, %s957_s17 }
 0x16a   :  { %1179 = vmatprep.subr.bf16.mxu0 %v1437_v54  ;;  %p1264_p8 = scmp.ne.s32.totalorder %s957_s17, %s1263_s18  ;;  %p1269_p10 = scmp.lt.s32.totalorder %s1263_s18, %s1263_s18 }
 0x16c   :  { %p1270_p11 = por %p1269_p10, %p1268_p9 }
 0x16e   :  { %p1271_p12 = pnand %p1270_p11, %p1264_p8 }
 0x23b   :  { %v1004_v38 = vpop.f32.mrb[2].mxu0 }
 0x23c   :  { %v1005_v39 = vpop.f32.mrb[3].mxu0 }
 0x23d   :  { %v1006_v40 = vadd.f32 %v1005_v39, %v1004_v38 }
 0x23f   :  { %v1607_v44 = vmul.f32 0.001953125, %v1006_v40 }
 0x241   :  { %969 = vmatmul.mubr.msk.f32.vlgmr.msra.gmra.mrb[4].mxu0 %vm178_vm2, %v1607_v44 }
 0x242   :  { %1181 = vmatpush3.bf16.msra.mxu0 %v1446_v1 }
 0x243   :  { %1183 = vmatprep.subr.bf16.mxu0 %v1455_v4 }
 0x246   :  { %1185 = vmatpush3.bf16.msra.mxu0 %v1463_v8 }
 0x247   :  { %1187 = vmatprep.subr.bf16.mxu0 %v1473_v11 }
 0x24a   :  { %1189 = vmatpush3.bf16.msra.mxu0 %v1481_v15 }
 0x24b   :  { %1191 = vmatprep.subr.bf16.mxu0 %v1491_v17 }
 0x24e   :  { %1193 = vmatpush3.bf16.msra.mxu0 %v1499_v20 }
 0x24f   :  { %1195 = vmatprep.subr.bf16.mxu0 %v1509_v22 }
 0x252   :  { %1197 = vmatpush3.bf16.msra.mxu0 %v1517_v25 }
 0x253   :  { %1199 = vmatprep.subr.bf16.mxu0 %v1527_v28 }
 0x256   :  { %1201 = vmatpush3.bf16.msra.mxu0 %v1535_v31 }
 0x257   :  { %1203 = vmatprep.subr.bf16.mxu0 %v1545_v34 }
 0x25a   :  { %1205 = vmatpush3.bf16.msra.mxu0 %v1553_v37 }
 0x25b   :  { %1207 = vmatprep.subr.bf16.mxu0 %v1566_v41 }
 0x25e   :  { %1209 = vmatpush3.bf16.msra.mxu0 %v1571_v45 }
 0x25f   :  { %1211 = vmatprep.subr.bf16.mxu0 %v1368_v7 }
 0x314   :  { %v630_v54 = vpop.f32.mrb[4].mxu0 }
 0x315   :  { %v638_v1 = vrot.slane %v630_v54, %v1576_v52  ;;  %v632_v4 = vpop.f32.mrb[5].mxu0 }
 0x316   :  { %v642_v8 = vrot.slane %v632_v4, %v1576_v52 }
 0x317   :  { %v643_v11 = vsub.f32 %v1580_v58, %v638_v1  ;;  %v645_v15 = vsub.f32 %v1584_v55, %v638_v1  ;;  %v647_v17 = vsub.f32 %v1588_v63, %v638_v1  ;;  %v649_v28 = vsub.f32 %v1597_v13, %v638_v1 }
 0x318   :  { %v644_v20 = vsub.f32 %v1582_v60, %v642_v8  ;;  %v646_v22 = vsub.f32 %v1586_v49, %v642_v8  ;;  %v648_v25 = vsub.f32 %v1590_v3, %v642_v8  ;;  %v650_v37 = vsub.f32 %v1600_v47, %v642_v8 }
 0x319   :  { %v651_v31 = vmul.f32 %v643_v11, %v643_v11  ;;  %v653_v34 = vmul.f32 %v645_v15, %v645_v15  ;;  %v655_v46 = vmul.f32 %v647_v17, %v647_v17  ;;  %v657_v53 = vmul.f32 %v649_v28, %v649_v28 }
 0x31a   :  { %v652_v41 = vmul.f32 %v644_v20, %v644_v20  ;;  %v654_v45 = vmul.f32 %v646_v22, %v646_v22  ;;  %v656_v50 = vmul.f32 %v648_v25, %v648_v25  ;;  %v658_v57 = vmul.f32 %v650_v37, %v650_v37 }
 0x31b   :  { %v659_v48 = vadd.f32 %v653_v34, %v651_v31 }
 0x31c   :  { %v668_v51 = vadd.f32 %v654_v45, %v652_v41 }
 0x31d   :  { %v660_v56 = vadd.f32 %v659_v48, %v655_v46 }
 0x31e   :  { %v669_v59 = vadd.f32 %v668_v51, %v656_v50 }
 0x31f   :  { %v661_v61 = vadd.f32 %v660_v56, %v657_v53 }
 0x320   :  { %v670_v43 = vadd.f32 %v669_v59, %v658_v57 }
 0x321   :  { %v662_v62 = vrot.slane %v661_v61, 4 }
 0x322   :  { %v671_v2 = vrot.slane %v670_v43, 4 }
 0x323   :  { %v663_v5 = vadd.f32 %v662_v62, %v661_v61 }
 0x324   :  { %v672_v6 = vadd.f32 %v671_v2, %v670_v43 }
 0x325   :  { %v664_v9 = vrot.slane %v663_v5, 2 }
 0x326   :  { %v673_v10 = vrot.slane %v672_v6, 2 }
 0x327   :  { %v665_v14 = vadd.f32 %v664_v9, %v663_v5 }
 0x328   :  { %v674_v16 = vadd.f32 %v673_v10, %v672_v6 }
 0x329   :  { %v666_v18 = vrot.slane %v665_v14, 1 }
 0x32a   :  { %v675_v19 = vrot.slane %v674_v16, 1 }
 0x32b   :  { %v667_v42 = vadd.f32 %v666_v18, %v665_v14 }
 0x32c   :  { %v676_v21 = vadd.f32 %v675_v19, %v674_v16 }
 0x32e   :  { %741 = vmatprep.mubr.f32.mxu0 %v676_v21 }
 0x32f   :  { %742 = vmatmul.mubr.f32.vlgmr.msra.gmra.mrb[6].mxu0 %v667_v42 }
 0x330   :  { %1213 = vmatpush1.bf16.msra.mxu0 %v1376_v12  ;;  %822 = vmatprep.mubr.f32.mxu0 %v1292_v0 }
 0x331   :  { %1215 = vmatprep.subr.bf16.mxu0 %v1368_v7 }
 0x402   :  { %v1039_v23 = vpop.f32.mrb[6].mxu0 }
 0x403   :  { %v1040_v24 = vpop.f32.mrb[7].mxu0 }
 0x404   :  { %v1041_v26 = vadd.f32 %v1040_v24, %v1039_v23 }
 0x406   :  { %v747_v27 = vmul.f32 0.001953125, %v1041_v26 }
 0x408   :  { %v750_v29 = vadd.f32 1e-05, %v747_v27 }
 0x40a   :  { %1239 = vrsqrt.f32 %v750_v29 }
 0x414   :  { %v1240_v32 = vpop.eup %1239 }
 0x415   :  { %v752_v33 = vmul.f32 %v1240_v32, %v748_v30 }
 0x417   :  { %970 = vmatmul.mubr.msk.f32.vlgmr.msra.gmra.mrb[8].mxu0 %vm178_vm2, %v752_v33  ;;  %v753_v7 = vmul.f32 %v752_v33, %v1607_v44 }
 0x418   :  { %1217 = vmatpush1.bf16.msra.mxu0 %v1376_v12  ;;  %896 = vmatprep.mubr.f32.mxu0 %v1292_v0 }
 0x419   :  { %v754_v36 = vsub.f32 %v749_v35, %v753_v7 }
 0x41b   :  { %971 = vmatmul.mubr.msk.f32.vlgmr.msra.gmra.mrb[10].mxu0 %vm178_vm2, %v754_v36 }
 0x4ea   :  { %v824_v38 = vpop.f32.mrb[8].mxu0 }
 0x4eb   :  { %v906_v39 = vrot.slane %v824_v38, %v1576_v52  ;;  %v826_v40 = vpop.f32.mrb[9].mxu0 }
 0x4ec   :  { %v910_v54 = vrot.slane %v826_v40, %v1576_v52 }
 0x4ed   :  { %v911_v1 = vmul.f32 %v1580_v58, %v906_v39  ;;  %v913_v4 = vmul.f32 %v1584_v55, %v906_v39  ;;  %v915_v44 = vmul.f32 %v1588_v63, %v906_v39  ;;  %v917_v12 = vmul.f32 %v1597_v13, %v906_v39 }
 0x4ee   :  { %v898_v8 = vpop.f32.mrb[10].mxu0  ;;  %v912_v0 = vmul.f32 %v1582_v60, %v910_v54  ;;  %v914_v17 = vmul.f32 %v1586_v49, %v910_v54  ;;  %v916_v20 = vmul.f32 %v1590_v3, %v910_v54  ;;  %v918_v22 = vmul.f32 %v1600_v47, %v910_v54 }
 0x4ef   :  { %v922_v11 = vrot.slane %v898_v8, %v1576_v52  ;;  %v900_v15 = vpop.f32.mrb[11].mxu0 }
 0x4f0   :  { %v926_v58 = vrot.slane %v900_v15, %v1576_v52 }
 0x4f1   :  { %v927_v25 = vadd.f32 %v922_v11, %v911_v1  ;;  %v929_v55 = vadd.f32 %v922_v11, %v913_v4  ;;  %v931_v28 = vadd.f32 %v922_v11, %v915_v44  ;;  %v933_v31 = vadd.f32 %v922_v11, %v917_v12 }
 0x4f2   :  { %v928_v63 = vadd.f32 %v926_v58, %v912_v0  ;;  %v930_v13 = vadd.f32 %v926_v58, %v914_v17  ;;  %v932_v60 = vadd.f32 %v926_v58, %v916_v20  ;;  %v934_v34 = vadd.f32 %v926_v58, %v918_v22 }
 0x4f3   :  { %v935_v37 = vmax.f32 %v927_v25, 0.0  ;;  %v937_v41 = vmax.f32 %v929_v55, 0.0  ;;  %v939_v45 = vmax.f32 %v931_v28, 0.0  ;;  %v941_v49 = vmax.f32 %v933_v31, 0.0 }
 0x4f4   :  { %v936_v46 = vmax.f32 %v928_v63, 0.0  ;;  %v938_v3 = vmax.f32 %v930_v13, 0.0  ;;  %v940_v48 = vmax.f32 %v932_v60, 0.0  ;;  %v942_v47 = vmax.f32 %v934_v34, 0.0 }
 0x4f5   :  { %943 = vst [vmem:[#allocation5] sm:$0xff] %v935_v37  ;;  %945 = vst [vmem:[#allocation5 + $0x10] sm:$0xff] %v937_v41 }
 0x4f6   :  { %947 = vst [vmem:[#allocation5 + $0x20] sm:$0xff] %v939_v45  ;;  %949 = vst [vmem:[#allocation5 + $0x30] sm:$0xff] %v941_v49 }
 0x4f7   :  { %944 = vst [vmem:[#allocation5 + $0x8] sm:$0xff] %v936_v46  ;;  %946 = vst [vmem:[#allocation5 + $0x18] sm:$0xff] %v938_v3 }
 0x4f8   :  { %948 = vst [vmem:[#allocation5 + $0x28] sm:$0xff] %v940_v48  ;;  %950 = vst [vmem:[#allocation5 + $0x38] sm:$0xff] %v942_v47 }
 0x4f9   :  { %1274 = shalt.err (!%p1271_p12)
}
 0x4fa   :  { %s1275_s20 = scalar_lea.hbm %s1683_s5, 1024 }
 0x4fb   :  { %p1276_p13 = scmp.ne.s32.totalorder %s1683_s5, %s1275_s20  ;;  %p1279_p0 = scmp.lt.u32.totalorder %s1275_s20, %s1683_s5 }
 0x4fd   :  { %p1281_p1 = pnand %p1279_p0, %p1276_p13 }
 0x4ff   :  { %1284 = shalt.err (!%p1281_p1)
}
 0x500   :  { %962 = dma.vmem_to_hbm [thread:$0]  %s957_s17, 1024, %s1683_s5, [#allocation4], %s1290_s28, %s1290_s28, %s1291_s29  }
 0x501   :  { %1287 = dma.done.wait [#allocation4], 1024  }
 0x502   :  { %1288 = vsyncadd [#allocation4], 4294966272 }
 0x503   :  { %966 = vsyncpa [#allocation3], 1 }
 0x504   :  { %967 = vsyncpa [#allocation4], 1 }

</bundles_post_ra>
